<compile_context>
chip_gen: v6e
topology: v6e:2x2x1
jax: 0.10.0
libtpu: 0.0.40
codegen_flags: <defaults>
</compile_context>

<pallas_src>
import functools

import jax
import jax.numpy as jnp
from jax import lax
from jax.experimental import pallas as pl
from jax.experimental.pallas import tpu as pltpu

LOG_SIG_MAX = 2.0
LOG_SIG_MIN = -20.0


def _round_up(x, m):
    return ((x + m - 1) // m) * m


def gaussian_policy_kernel(num_actions, x_ref, w1_ref, b1_ref, w2_ref, b2_ref,
                           wh_ref, bh_ref, out_ref):
    # Whole MLP runs on-chip for one batch tile: 3 matmuls + relu + clamp.
    x = x_ref[...]
    h1 = jnp.dot(x, w1_ref[...], preferred_element_type=jnp.float32) + b1_ref[...]
    h1 = jnp.maximum(h1, 0.0)
    h2 = jnp.dot(h1, w2_ref[...], preferred_element_type=jnp.float32) + b2_ref[...]
    h2 = jnp.maximum(h2, 0.0)
    # Fused heads: lanes [0, A) = mean, [A, 2A) = log_std, rest = zero padding.
    head = jnp.dot(h2, wh_ref[...], preferred_element_type=jnp.float32) + bh_ref[...]
    lane = lax.broadcasted_iota(jnp.int32, head.shape, 1)
    clipped = jnp.minimum(jnp.maximum(head, LOG_SIG_MIN), LOG_SIG_MAX)
    # Only log_std lanes get the clamp; padded lanes are sliced off in the wrapper.
    out_ref[...] = jnp.where(lane < num_actions, head, clipped)


def gaussian_policy_forward(state, params):
    """Pallas forward pass of GaussianPolicy: returns (mean, log_std)."""
    B, num_inputs = state.shape
    H = params["w1"].shape[1]
    A = params["wm"].shape[1]

    # Fused, lane-dense head weight/bias (padded to a multiple of 128 lanes).
    out_pad = _round_up(max(2 * A, 128), 128)
    w_head = jnp.zeros((H, out_pad), jnp.float32)
    w_head = w_head.at[:, :A].set(params["wm"]).at[:, A:2 * A].set(params["ws"])
    b_head = jnp.zeros((1, out_pad), jnp.float32)
    b_head = b_head.at[:, :A].set(params["bm"][0]).at[:, A:2 * A].set(params["bs"][0])

    # Batch tile: multiple of 8 sublanes, capped so large batches pipeline over HBM.
    TB = min(256, _round_up(B, 8))
    grid = (pl.cdiv(B, TB),)

    batch_map = lambda i: (i, 0)   # tiles over the batch axis
    const_map = lambda i: (0, 0)   # weights/biases resident across the grid

    flops = 2 * B * (num_inputs * H + H * H + H * 2 * A)
    bytes_accessed = 4 * (B * num_inputs + num_inputs * H + H
                          + H * H + H + H * out_pad + out_pad + B * out_pad)

    out = pl.pallas_call(
        functools.partial(gaussian_policy_kernel, A),
        out_shape=jax.ShapeDtypeStruct((B, out_pad), jnp.float32),
        grid=grid,
        in_specs=[
            pl.BlockSpec((TB, num_inputs), batch_map),
            pl.BlockSpec((num_inputs, H), const_map),
            pl.BlockSpec((1, H), const_map),
            pl.BlockSpec((H, H), const_map),
            pl.BlockSpec((1, H), const_map),
            pl.BlockSpec((H, out_pad), const_map),
            pl.BlockSpec((1, out_pad), const_map),
        ],
        out_specs=pl.BlockSpec((TB, out_pad), batch_map),
        compiler_params=pltpu.CompilerParams(
            dimension_semantics=("parallel",)),
        cost_estimate=pl.CostEstimate(
            flops=flops, transcendentals=0, bytes_accessed=bytes_accessed),
    )(state, params["w1"], params["b1"], params["w2"], params["b2"],
      w_head, b_head)

    mean = out[:, :A]
    log_std = out[:, A:2 * A]
    return mean, log_std


def xavier_uniform(key, fan_in, fan_out, gain=1.0):
    # Matches torch.nn.init.xavier_uniform_ (gain=1); stored as [in, out].
    limit = gain * jnp.sqrt(6.0 / (fan_in + fan_out))
    return jax.random.uniform(key, (fan_in, fan_out), jnp.float32, -limit, limit)


def init_params(key, num_inputs, num_actions, hidden_dim):
    k1, k2, k3, k4 = jax.random.split(key, 4)
    return {
        "w1": xavier_uniform(k1, num_inputs, hidden_dim),
        "b1": jnp.zeros((1, hidden_dim), jnp.float32),
        "w2": xavier_uniform(k2, hidden_dim, hidden_dim),
        "b2": jnp.zeros((1, hidden_dim), jnp.float32),
        "wm": xavier_uniform(k3, hidden_dim, num_actions),
        "bm": jnp.zeros((1, num_actions), jnp.float32),
        "ws": xavier_uniform(k4, hidden_dim, num_actions),
        "bs": jnp.zeros((1, num_actions), jnp.float32),
    }
    # TODO(synk): sample() (rsample + tanh-squash log-prob) is stochastic glue;
    # it is implemented in plain JAX on top of (mean, log_std) when needed.


def reference_forward(state, p):
    h1 = jnp.maximum(state @ p["w1"] + p["b1"], 0.0)
    h2 = jnp.maximum(h1 @ p["w2"] + p["b2"], 0.0)
    mean = h2 @ p["wm"] + p["bm"]
    log_std = jnp.clip(h2 @ p["ws"] + p["bs"], LOG_SIG_MIN, LOG_SIG_MAX)
    return mean, log_std


if __name__ == "__main__":
    key = jax.random.PRNGKey(0)
    k_param, k_state = jax.random.split(key)

    batch, num_inputs, num_actions, hidden_dim = 8, 16, 8, 32
    params = init_params(k_param, num_inputs, num_actions, hidden_dim)
    state = jax.random.normal(k_state, (batch, num_inputs), jnp.float32)

    mean, log_std = gaussian_policy_forward(state, params)
    jax.block_until_ready((mean, log_std))

    ref_mean, ref_log_std = reference_forward(state, params)
    assert mean.shape == (batch, num_actions)
    assert log_std.shape == (batch, num_actions)
    assert jnp.allclose(mean, ref_mean, atol=1e-5)
    assert jnp.allclose(log_std, ref_log_std, atol=1e-5)

    print("KERNEL_OK")
</pallas_src>

<mosaic_0001>
module attributes {stable_mosaic.version = 11 : i64} {
  func.func @gaussian_policy_kernel(%arg0: i32, %arg1: memref<8x16xf32, #tpu.memory_space<vmem>>, %arg2: memref<16x32xf32, #tpu.memory_space<vmem>>, %arg3: memref<1x32xf32, #tpu.memory_space<vmem>>, %arg4: memref<32x32xf32, #tpu.memory_space<vmem>>, %arg5: memref<1x32xf32, #tpu.memory_space<vmem>>, %arg6: memref<32x128xf32, #tpu.memory_space<vmem>>, %arg7: memref<1x128xf32, #tpu.memory_space<vmem>>, %arg8: memref<8x128xf32, #tpu.memory_space<vmem>>) attributes {dimension_semantics = [#tpu.dimension_semantics<parallel>], iteration_bounds = array<i64: 1>, scalar_prefetch = 0 : i64, scratch_operands = 0 : i64, tpu.core_type = #tpu.core_type<tc>, window_params = [{transform_indices = @transform_0, window_bounds = array<i64: 8, 16>}, {pipeline_mode = #tpu.pipeline_mode<synchronous>, transform_indices = @transform_1, window_bounds = array<i64: 16, 32>}, {pipeline_mode = #tpu.pipeline_mode<synchronous>, transform_indices = @transform_2, window_bounds = array<i64: 1, 32>}, {pipeline_mode = #tpu.pipeline_mode<synchronous>, transform_indices = @transform_3, window_bounds = array<i64: 32, 32>}, {pipeline_mode = #tpu.pipeline_mode<synchronous>, transform_indices = @transform_4, window_bounds = array<i64: 1, 32>}, {pipeline_mode = #tpu.pipeline_mode<synchronous>, transform_indices = @transform_5, window_bounds = array<i64: 32, 128>}, {pipeline_mode = #tpu.pipeline_mode<synchronous>, transform_indices = @transform_6, window_bounds = array<i64: 1, 128>}, {transform_indices = @transform_7, window_bounds = array<i64: 8, 128>}]} {
    %c0 = arith.constant 0 : index
    %c0_0 = arith.constant 0 : index
    %0 = vector.load %arg1[%c0, %c0_0] : memref<8x16xf32, #tpu.memory_space<vmem>>, vector<8x16xf32>
    %c0_1 = arith.constant 0 : index
    %c0_2 = arith.constant 0 : index
    %1 = vector.load %arg2[%c0_1, %c0_2] : memref<16x32xf32, #tpu.memory_space<vmem>>, vector<16x32xf32>
    %cst = arith.constant dense<0.000000e+00> : vector<8x32xf32>
    %2 = tpu.matmul %0, %1, %cst {dimension_numbers = #tpu.dot_dimension_numbers<[1], [0], [0], [1], [0, 0, 1, 1], [], []>} : vector<8x16xf32>, vector<16x32xf32>, vector<8x32xf32> -> vector<8x32xf32>
    %c0_3 = arith.constant 0 : index
    %c0_4 = arith.constant 0 : index
    %3 = vector.load %arg3[%c0_3, %c0_4] : memref<1x32xf32, #tpu.memory_space<vmem>>, vector<1x32xf32>
    %4 = vector.broadcast %3 : vector<1x32xf32> to vector<8x32xf32>
    %5 = arith.addf %2, %4 : vector<8x32xf32>
    %cst_5 = arith.constant 0.000000e+00 : f32
    %6 = vector.broadcast %cst_5 : f32 to vector<8x32xf32>
    %7 = arith.maximumf %5, %6 : vector<8x32xf32>
    %c0_6 = arith.constant 0 : index
    %c0_7 = arith.constant 0 : index
    %8 = vector.load %arg4[%c0_6, %c0_7] : memref<32x32xf32, #tpu.memory_space<vmem>>, vector<32x32xf32>
    %cst_8 = arith.constant dense<0.000000e+00> : vector<8x32xf32>
    %9 = tpu.matmul %7, %8, %cst_8 {dimension_numbers = #tpu.dot_dimension_numbers<[1], [0], [0], [1], [0, 0, 1, 1], [], []>} : vector<8x32xf32>, vector<32x32xf32>, vector<8x32xf32> -> vector<8x32xf32>
    %c0_9 = arith.constant 0 : index
    %c0_10 = arith.constant 0 : index
    %10 = vector.load %arg5[%c0_9, %c0_10] : memref<1x32xf32, #tpu.memory_space<vmem>>, vector<1x32xf32>
    %11 = vector.broadcast %10 : vector<1x32xf32> to vector<8x32xf32>
    %12 = arith.addf %9, %11 : vector<8x32xf32>
    %cst_11 = arith.constant 0.000000e+00 : f32
    %13 = vector.broadcast %cst_11 : f32 to vector<8x32xf32>
    %14 = arith.maximumf %12, %13 : vector<8x32xf32>
    %c0_12 = arith.constant 0 : index
    %c0_13 = arith.constant 0 : index
    %15 = vector.load %arg6[%c0_12, %c0_13] : memref<32x128xf32, #tpu.memory_space<vmem>>, vector<32x128xf32>
    %cst_14 = arith.constant dense<0.000000e+00> : vector<8x128xf32>
    %16 = tpu.matmul %14, %15, %cst_14 {dimension_numbers = #tpu.dot_dimension_numbers<[1], [0], [0], [1], [0, 0, 1, 1], [], []>} : vector<8x32xf32>, vector<32x128xf32>, vector<8x128xf32> -> vector<8x128xf32>
    %c0_15 = arith.constant 0 : index
    %c0_16 = arith.constant 0 : index
    %17 = vector.load %arg7[%c0_15, %c0_16] : memref<1x128xf32, #tpu.memory_space<vmem>>, vector<1x128xf32>
    %18 = vector.broadcast %17 : vector<1x128xf32> to vector<8x128xf32>
    %19 = arith.addf %16, %18 : vector<8x128xf32>
    %20 = tpu.iota {dimensions = array<i32: 1>} : vector<8x128xi32>
    %cst_17 = arith.constant -2.000000e+01 : f32
    %21 = vector.broadcast %cst_17 : f32 to vector<8x128xf32>
    %22 = arith.maximumf %19, %21 : vector<8x128xf32>
    %cst_18 = arith.constant 2.000000e+00 : f32
    %23 = vector.broadcast %cst_18 : f32 to vector<8x128xf32>
    %24 = arith.minimumf %22, %23 : vector<8x128xf32>
    %c8_i32 = arith.constant 8 : i32
    %25 = vector.broadcast %c8_i32 : i32 to vector<8x128xi32>
    %26 = arith.cmpi slt, %20, %25 : vector<8x128xi32>
    %27 = arith.select %26, %19, %24 : vector<8x128xi1>, vector<8x128xf32>
    %c0_19 = arith.constant 0 : index
    %c0_20 = arith.constant 0 : index
    %28 = vector.load %arg8[%c0_19, %c0_20] : memref<8x128xf32, #tpu.memory_space<vmem>>, vector<8x128xf32>
    tpu.vector_store %arg8[%c0_19, %c0_20], %27 {strides = array<i32>} : memref<8x128xf32, #tpu.memory_space<vmem>>, vector<8x128xf32>,
    return
  }
  func.func @transform_0(%arg0: i32) -> (i32, i32) {
    %c0_i32 = arith.constant 0 : i32
    %c0_i32_0 = arith.constant 0 : i32
    return %arg0, %c0_i32 : i32, i32
  }
  func.func @transform_1(%arg0: i32) -> (i32, i32) {
    %c0_i32 = arith.constant 0 : i32
    %c0_i32_0 = arith.constant 0 : i32
    %c0_i32_1 = arith.constant 0 : i32
    return %c0_i32, %c0_i32_0 : i32, i32
  }
  func.func @transform_2(%arg0: i32) -> (i32, i32) {
    %c0_i32 = arith.constant 0 : i32
    %c0_i32_0 = arith.constant 0 : i32
    %c0_i32_1 = arith.constant 0 : i32
    return %c0_i32, %c0_i32_0 : i32, i32
  }
  func.func @transform_3(%arg0: i32) -> (i32, i32) {
    %c0_i32 = arith.constant 0 : i32
    %c0_i32_0 = arith.constant 0 : i32
    %c0_i32_1 = arith.constant 0 : i32
    return %c0_i32, %c0_i32_0 : i32, i32
  }
  func.func @transform_4(%arg0: i32) -> (i32, i32) {
    %c0_i32 = arith.constant 0 : i32
    %c0_i32_0 = arith.constant 0 : i32
    %c0_i32_1 = arith.constant 0 : i32
    return %c0_i32, %c0_i32_0 : i32, i32
  }
  func.func @transform_5(%arg0: i32) -> (i32, i32) {
    %c0_i32 = arith.constant 0 : i32
    %c0_i32_0 = arith.constant 0 : i32
    %c0_i32_1 = arith.constant 0 : i32
    return %c0_i32, %c0_i32_0 : i32, i32
  }
  func.func @transform_6(%arg0: i32) -> (i32, i32) {
    %c0_i32 = arith.constant 0 : i32
    %c0_i32_0 = arith.constant 0 : i32
    %c0_i32_1 = arith.constant 0 : i32
    return %c0_i32, %c0_i32_0 : i32, i32
  }
  func.func @transform_7(%arg0: i32) -> (i32, i32) {
    %c0_i32 = arith.constant 0 : i32
    %c0_i32_0 = arith.constant 0 : i32
    return %arg0, %c0_i32 : i32, i32
  }
}

</mosaic_0001>

<bundles_post_ra>
// kernel: tpu_custom_call.1
= control target key start
LH: loop header
LB: loop body
LE: loop exit
PB: predicated region body
PF: predicated region fallthrough
CT: control target
= control target key end

     0   :  { %12 = vsyncpa [#allocation3], 0  ;;  %s611_s0 = inlined_call_operand.hbm [shape: f32[8,16], index: 0, kind: input, shape index: {}]   ;;  %s612_s1 = inlined_call_operand.hbm [shape: f32[16,32], index: 1, kind: input, shape index: {}]   ;;  %s613_s2 = inlined_call_operand.vmem [shape: f32[1,32], index: 2, kind: input, shape index: {}]   ;;  %s614_s3 = inlined_call_operand.hbm [shape: f32[32,32], index: 3, kind: input, shape index: {}]   ;;  %s615_s4 = inlined_call_operand.vmem [shape: f32[1,32], index: 4, kind: input, shape index: {}]   ;;  %s616_s5 = inlined_call_operand.hbm [shape: f32[32,128], index: 5, kind: input, shape index: {}]   ;;  %s617_s6 = inlined_call_operand.vmem [shape: f32[1,128], index: 6, kind: input, shape index: {}]   ;;  %s618_s7 = inlined_call_operand.hbm [shape: f32[8,128], index: 7, kind: output, shape index: {}]  }
   0x1   :  { %13 = vsyncpa [#allocation6], 0 }
   0x2   :  { %14 = vsyncpa [#allocation9], 0 }
   0x3   :  { %15 = vsyncpa [#allocation4], 0  ;;  %s524_s24 = smov [#allocation5]  }
   0x4   :  { %s31_s25 = sshll.u32 %s524_s24, 4  ;;  %s32_s25 = int_to_ptr.vmem [resolvable:$true] %s31_s25 }
   0x5   :  { %s424_s26 = scalar_lea.vmem %s32_s25, 256  ;;  %p429_p1 = scmp.lt.s32.totalorder %s32_s25, %s32_s25 }
   0x6   :  { %p425_p0 = scmp.ne.s32.totalorder %s32_s25, %s424_s26  ;;  %p430_p2 = scmp.lt.s32.totalorder %s424_s26, %s424_s26 }
   0x8   :  { %p431_p3 = por %p430_p2, %p429_p1 }
   0xa   :  { %p432_p4 = pnand %p431_p3, %p425_p0 }
   0xc   :  { %435 = shalt.err (!%p432_p4)
}
   0xd   :  { %s525_s27 = smov 128   ;;  %s526_s28 = smov 8  }
   0xe   :  { %37 = dma.hbm_to_vmem [thread:$0]  %s612_s1, 256, %s32_s25, [#allocation6], %s525_s27, %s525_s27, %s526_s28  }
   0xf   :  { %s527_s8 = smov [#allocation2]   ;;  %s528_s10 = smov [#allocation7]  }
  0x10   :  { %s22_s9 = sshll.u32 %s527_s8, 4  ;;  %s45_s11 = sshll.u32 %s528_s10, 4  ;;  %s23_s9 = int_to_ptr.vmem [resolvable:$true] %s22_s9  ;;  %s46_s11 = int_to_ptr.vmem [resolvable:$true] %s45_s11 }
  0x11   :  { %s444_s12 = scalar_lea.vmem %s23_s9, 128  ;;  %p449_p6 = scmp.lt.s32.totalorder %s23_s9, %s23_s9 }
  0x12   :  { %p445_p5 = scmp.ne.s32.totalorder %s23_s9, %s444_s12  ;;  %p450_p7 = scmp.lt.s32.totalorder %s444_s12, %s444_s12 }
  0x14   :  { %p451_p8 = por %p450_p7, %p449_p6 }
  0x16   :  { %p452_p9 = pnand %p451_p8, %p445_p5 }
  0x18   :  { %455 = shalt.err (!%p452_p9)
}
  0x19   :  { %25 = dma.hbm_to_vmem [thread:$0]  %s611_s0, 128, %s23_s9, [#allocation3]  }
  0x1a   :  { %s464_s15 = scalar_lea.vmem %s46_s11, 512  ;;  %p469_p11 = scmp.lt.s32.totalorder %s46_s11, %s46_s11 }
  0x1b   :  { %p465_p10 = scmp.ne.s32.totalorder %s46_s11, %s464_s15  ;;  %p470_p12 = scmp.lt.s32.totalorder %s464_s15, %s464_s15 }
  0x1d   :  { %p471_p13 = por %p470_p12, %p469_p11 }
  0x1f   :  { %p472_p0 = pnand %p471_p13, %p465_p10 }
  0x21   :  { %475 = shalt.err (!%p472_p0)
}
  0x22   :  { %51 = dma.hbm_to_vmem [thread:$0]  %s614_s3, 512, %s46_s11, [#allocation6], %s525_s27, %s525_s27, %s526_s28  }
  0x23   :  { %s529_s17 = smov [#allocation8]  }
  0x24   :  { %s59_s18 = sshll.u32 %s529_s17, 4  ;;  %s60_s18 = int_to_ptr.vmem [resolvable:$true] %s59_s18 }
  0x25   :  { %s484_s19 = scalar_lea.vmem %s60_s18, 512  ;;  %p489_p2 = scmp.lt.s32.totalorder %s60_s18, %s60_s18 }
  0x26   :  { %p485_p1 = scmp.ne.s32.totalorder %s60_s18, %s484_s19  ;;  %p490_p3 = scmp.lt.s32.totalorder %s484_s19, %s484_s19 }
  0x28   :  { %p491_p4 = por %p490_p3, %p489_p2 }
  0x2a   :  { %p492_p5 = pnand %p491_p4, %p485_p1 }
  0x2c   :  { %495 = shalt.err (!%p492_p5)
}
  0x2d   :  { %65 = dma.hbm_to_vmem [thread:$0]  %s616_s5, 512, %s60_s18, [#allocation9], %s525_s27, %s525_s27, %s526_s28  }
  0x2e   :  { %516 = dma.done.wait [#allocation3], 128  }
  0x2f   :  { %517 = vsyncadd [#allocation3], 4294967168 }
  0x30   :  { %518 = dma.done.wait [#allocation6], 768  }
  0x31   :  { %519 = vsyncadd [#allocation6], 4294966528 }
  0x32   :  { %520 = dma.done.wait [#allocation9], 512  }
  0x33   :  { %521 = vsyncadd [#allocation9], 4294966784  ;;  %v530_v0 = vmov 0.0   ;;  %vm531_vm0 = vmmov 0   ;;  %v82_v1 = vld [vmem:[#allocation5 + $0x8] sm:$0xff]  ;;  %v81_v2 = vld [vmem:[#allocation5] sm:$0xff]  ;;  %v335_v22 = vlaneseq }
  0x34   :  { %378 = vmatprep.subr.mxu0 %v530_v0  ;;  %382 = vmatprep.mubr.msk.f32.mxu0 %vm531_vm0, %v530_v0  ;;  %v80_v3 = vld [vmem:[#allocation2] sm:$0xff]  ;;  %vm90_vm1 = vcmask 130048   ;;  %v168_v4 = vld [vmem:[#allocation7 + $0x18] sm:$0xff]  ;;  %v167_v5 = vld [vmem:[#allocation7 + $0x10] sm:$0xff]  ;;  %vm176_vm2 = vcmask 261120   ;;  %s532_s24 = smov [#allocation10]  }
  0x35   :  { %385 = vmatprep.subr.mxu1 %v530_v0  ;;  %393 = vmatprep.mubr.msk.f32.mxu1 %vm531_vm0, %v530_v0  ;;  %v166_v6 = vld [vmem:[#allocation7 + $0x8] sm:$0xff]  ;;  %v165_v7 = vld [vmem:[#allocation7] sm:$0xff]  ;;  %v254_v8 = vld [vmem:[#allocation8 + $0x18] sm:$0xff]  ;;  %v336_v25 = vand.u32 127, %v335_v22  ;;  %s348_s25 = sshll.u32 %s532_s24, 4  ;;  %s349_s25 = int_to_ptr.vmem [resolvable:$true] %s348_s25 }
  0x36   :  { %379 = vmatpush3.msra.mxu0 %v82_v1  ;;  %386 = vmatpush3.msra.mxu1 %v168_v4  ;;  %v359_v9 = vld [vmem:[%s613_s2] ss:$0 sm:$0xff]  ;;  %v253_v14 = vld [vmem:[#allocation8 + $0x10] sm:$0xff]  ;;  %v251_v16 = vld [vmem:[#allocation8] sm:$0xff]  ;;  %p501_p7 = scmp.lt.s32.totalorder %s349_s25, %s349_s25 }
  0x37   :  { %380 = vmatprep.subr.mxu0 %v530_v0  ;;  %387 = vmatprep.subr.mxu1 %v530_v0  ;;  %v252_v15 = vld [vmem:[#allocation8 + $0x8] sm:$0xff]  ;;  %vm339_vm3 = vcmp.lt.s32.totalorder %v336_v25, 8 }
  0x38   :  { %381 = vmatpush3.msra.mxu0 %v81_v2  ;;  %388 = vmatpush3.msra.mxu1 %v167_v5  ;;  %v361_v17 = vld [vmem:[%s615_s4] ss:$0 sm:$0xff]  ;;  %s496_s4 = scalar_lea.vmem %s349_s25, 128 }
  0x39   :  { %383 = vmatmul.mubr.msk.f32.vlgmr.msra.gmra.mxu0 %vm90_vm1, %v80_v3  ;;  %396 = vmatprep.subr.mxu0 %v530_v0  ;;  %v363_v23 = vld [vmem:[%s617_s6] ss:$0 sm:$0xff]  ;;  %p497_p6 = scmp.ne.s32.totalorder %s349_s25, %s496_s4  ;;  %p502_p8 = scmp.lt.s32.totalorder %s496_s4, %s496_s4 }
  0x3a   :  { %404 = vmatprep.mubr.msk.f32.mxu0 %vm531_vm0, %v530_v0  ;;  %389 = vmatprep.subr.mxu1 %v530_v0 }
  0x3b   :  { %390 = vmatpush3.msra.mxu1 %v166_v6  ;;  %397 = vmatpush3.msra.mxu0 %v254_v8  ;;  %p503_p9 = por %p502_p8, %p501_p7 }
  0x3c   :  { %391 = vmatprep.subr.mxu1 %v530_v0  ;;  %398 = vmatprep.subr.mxu0 %v530_v0 }
  0x3d   :  { %392 = vmatpush3.msra.mxu1 %v165_v7  ;;  %399 = vmatpush3.msra.mxu0 %v253_v14  ;;  %p504_p10 = pnand %p503_p9, %p497_p6 }
  0x3e   :  { %400 = vmatprep.subr.mxu0 %v530_v0 }
  0x3f   :  { %401 = vmatpush3.msra.mxu0 %v252_v15 }
  0x40   :  { %402 = vmatprep.subr.mxu0 %v530_v0 }
  0x41   :  { %403 = vmatpush3.msra.mxu0 %v251_v16 }
  0xf9   :  { %v160_v10 = vpop.f32.mrf.mxu0 }
  0xfa   :  { %v161_v11 = vadd.f32 %v359_v9, %v160_v10 }
  0xfb   :  { %v384_v12 = vpop.f32.mrf.mxu0 }
  0xfc   :  { %v164_v13 = vmax.f32 %v161_v11, 0.0 }
  0xfe   :  { %394 = vmatmul.mubr.msk.f32.vlgmr.msra.gmra.mxu1 %vm176_vm2, %v164_v13 }
 0x1be   :  { %v246_v18 = vpop.f32.mrf.mxu1 }
 0x1bf   :  { %v247_v19 = vadd.f32 %v361_v17, %v246_v18 }
 0x1c0   :  { %v395_v20 = vpop.f32.mrf.mxu1 }
 0x1c1   :  { %v250_v21 = vmax.f32 %v247_v19, 0.0 }
 0x1c3   :  { %405 = vmatmul.mubr.msk.f32.vlgmr.msra.gmra.mxu0 %vm176_vm2, %v250_v21 }
 0x283   :  { %v331_v24 = vpop.f32.mrf.mxu0 }
 0x284   :  { %v332_v26 = vadd.f32 %v363_v23, %v331_v24 }
 0x285   :  { %v406_v27 = vpop.f32.mrf.mxu0 }
 0x286   :  { %v337_v28 = vmax.f32 %v332_v26, -20.0 }
 0x288   :  { %v338_v29 = vmin.f32 %v337_v28, 2.0 }
 0x28a   :  { %v340_v30 = vsel %vm339_vm3, %v332_v26, %v338_v29 }
 0x28b   :  { %341 = vst [vmem:[#allocation10] sm:$0xff] %v340_v30 }
 0x28c   :  { %507 = shalt.err (!%p504_p10)
}
 0x28d   :  { %351 = dma.vmem_to_hbm [thread:$0]  %s349_s25, 128, %s618_s7, [#allocation4]  }
 0x28e   :  { %522 = dma.done.wait [#allocation4], 128  }
 0x28f   :  { %523 = vsyncadd [#allocation4], 4294967168 }
 0x290   :  { %355 = vsyncpa [#allocation3], 1 }
 0x291   :  { %356 = vsyncpa [#allocation6], 1 }
 0x292   :  { %357 = vsyncpa [#allocation9], 1 }
 0x293   :  { %358 = vsyncpa [#allocation4], 1 }

</bundles_post_ra>
